<compile_context>
chip_gen: v7x
topology: tpu7x:2x2x1
jax: 0.10.0
libtpu: 0.0.40
codegen_flags: <defaults>
</compile_context>

<pallas_src>
import functools

import jax
import jax.numpy as jnp
from jax.experimental import pallas as pl
from jax.experimental.pallas import tpu as pltpu

LANE = 128
SUBLANE = 8


def _round_up(x, m):
    return (x + m - 1) // m * m


def _dueling_kernel(x_ref, w1_ref, w2_ref, wh1_ref, wh2_ref, b_ref, out_ref,
                    *, n_hidden, n_out):
    H = n_hidden
    mm_dtype = w1_ref.dtype            # f32 (demo) or bf16 (production)

    x = x_ref[...]                     # already in mm_dtype (wrapper casts once)

    # fc1 + relu   (bias / relu / accumulation stay f32 -- v5e has no bf16 VPU)
    h = jnp.dot(x, w1_ref[...], preferred_element_type=jnp.float32)
    h = jnp.maximum(h + b_ref[0:1, :H], 0.0)

    # fc2 + relu
    h = jnp.dot(h.astype(mm_dtype), w2_ref[...], preferred_element_type=jnp.float32)
    h = jnp.maximum(h + b_ref[1:2, :2 * H], 0.0)

    # Fused hidden heads: cols [0, H) -> adv branch, [H, 2H) -> val branch.
    hv = jnp.dot(h.astype(mm_dtype), wh1_ref[...], preferred_element_type=jnp.float32)
    hv = jnp.maximum(hv + b_ref[2:3, :2 * H], 0.0)

    # Fused output heads (block-diagonal weight, zero cross terms):
    #   cols [0, n_out)     -> advantage logits
    #   col  n_out          -> state value
    #   cols (n_out, LANE)  -> zero padding (kept for a lane-dense store)
    lane_out = out_ref.shape[1]
    head = jnp.dot(hv.astype(mm_dtype), wh2_ref[...],
                   preferred_element_type=jnp.float32) + b_ref[3:4, :lane_out]

    adv = head[:, :n_out]                        # [TB, n_out]
    val = head[:, n_out:n_out + 1]               # [TB, 1]
    adv_mean = jnp.sum(adv, axis=1, keepdims=True) * (1.0 / n_out)

    # Q_j = adv_j + (val - mean(adv)) for j < n_out; lanes >= n_out are
    # don't-care (sliced off / ignored by the caller).  Full-width, unmasked vst.
    out_ref[...] = (head + (val - adv_mean)).astype(out_ref.dtype)


def pack_params(p, n_hidden, n_out, *, matmul_dtype=jnp.float32):
    """Fuse the per-head weights/biases into the kernel's packed layout."""
    H = n_hidden
    lane_out = _round_up(n_out + 1, LANE)

    # fc1_adv || fc1_val  -> [2H, 2H]
    wh1 = jnp.concatenate([p["wa1"], p["wv1"]], axis=1)

    # Block-diagonal fc2_adv / fc2_val -> [2H, lane_out]
    wh2 = jnp.zeros((2 * H, lane_out), jnp.float32)
    wh2 = wh2.at[:H, :n_out].set(p["wa2"])
    wh2 = wh2.at[H:, n_out:n_out + 1].set(p["wv2"])

    # All biases in one slab (one DMA): row0=b1, row1=b2, row2=ba1||bv1, row3=ba2|bv2
    bw = max(2 * H, lane_out)
    bias = jnp.zeros((4, bw), jnp.float32)
    bias = bias.at[0, :H].set(p["b1"][0])
    bias = bias.at[1, :2 * H].set(p["b2"][0])
    bias = bias.at[2, :H].set(p["ba1"][0])
    bias = bias.at[2, H:2 * H].set(p["bv1"][0])
    bias = bias.at[3, :n_out].set(p["ba2"][0])
    bias = bias.at[3, n_out].set(p["bv2"][0, 0])

    return dict(
        w1=p["w1"].astype(matmul_dtype),
        w2=p["w2"].astype(matmul_dtype),
        wh1=wh1.astype(matmul_dtype),
        wh2=wh2.astype(matmul_dtype),
        bias=bias,                       # biases / elementwise stay f32
        n_hidden=H,
        n_out=n_out,
    )


def _dueling_xla(x, packed, *, out_dtype=jnp.float32):
    """Plain-XLA path for tiny batches where launch/DMA overhead dominates."""
    H, n_out = packed["n_hidden"], packed["n_out"]
    lane_out = packed["wh2"].shape[1]
    b = packed["bias"]
    w = lambda k: packed[k].astype(jnp.float32)
    h = jax.nn.relu(x.astype(jnp.float32) @ w("w1") + b[0, :H])
    h = jax.nn.relu(h @ w("w2") + b[1, :2 * H])
    hv = jax.nn.relu(h @ w("wh1") + b[2, :2 * H])
    head = hv @ w("wh2") + b[3, :lane_out]
    adv = head[:, :n_out]
    val = head[:, n_out:n_out + 1]
    q = adv + (val - jnp.mean(adv, axis=1, keepdims=True))
    return q.astype(out_dtype)


def dueling_dqn_forward(x, packed, *, block_b=2048, out_dtype=jnp.float32,
                        return_padded=False, xla_fallback_batch=0):
    """x: [B, n_in].  packed: output of pack_params."""
    w1, w2 = packed["w1"], packed["w2"]
    wh1, wh2, bias = packed["wh1"], packed["wh2"], packed["bias"]
    H, n_out = packed["n_hidden"], packed["n_out"]

    B, n_in = x.shape
    lane_out = wh2.shape[1]
    mm_dtype = w1.dtype

    # Tiny-batch escape hatch: a single grid step is pure launch/DMA overhead.
    # Production callers can set xla_fallback_batch ~256; default keeps Pallas.
    if B < xla_fallback_batch:
        return _dueling_xla(x, packed, out_dtype=out_dtype)

    # Cast activations once, outside the kernel (no per-tile VPU cast in-kernel).
    x = x.astype(mm_dtype)

    # Batch tile: multiple of 8 (sublane), capped at block_b, and chosen so the
    # grid has >= 2 steps whenever possible (one step per TensorCore on v7x).
    tb = min(block_b, max(SUBLANE, _round_up(pl.cdiv(B, 2), SUBLANE)))
    b_pad = _round_up(B, tb)
    if b_pad != B:
        x = jnp.pad(x, ((0, b_pad - B), (0, 0)))

    kernel = functools.partial(_dueling_kernel, n_hidden=H, n_out=n_out)

    # Resident operands: constant block index -> fetched once; single buffer
    # reclaims the VMEM that default double-buffering would waste.
    def resident(arr):
        return pl.BlockSpec(arr.shape, lambda i: (0, 0),
                            pipeline_mode=pl.Buffered(1))

    # Explicit VMEM budget (>= 32 MiB so big tiles don't trip v5e's 16 MiB
    # scoped default; capped at 64 MiB for v7x's physical VMEM).
    weight_bytes = sum(int(a.size) * a.dtype.itemsize
                       for a in (w1, w2, wh1, wh2, bias))
    io_bytes = 2 * tb * (n_in * jnp.dtype(mm_dtype).itemsize
                         + lane_out * jnp.dtype(out_dtype).itemsize)
    vmem_limit = int(min(64 * 2 ** 20,
                         max(32 * 2 ** 20, 2 * (weight_bytes + io_bytes))))

    out_padded = pl.pallas_call(
        kernel,
        out_shape=jax.ShapeDtypeStruct((b_pad, lane_out), out_dtype),
        grid=(b_pad // tb,),
        in_specs=[
            pl.BlockSpec((tb, n_in), lambda i: (i, 0)),    # x: tiled over batch
            resident(w1),
            resident(w2),
            resident(wh1),
            resident(wh2),
            resident(bias),
        ],
        out_specs=pl.BlockSpec((tb, lane_out), lambda i: (i, 0)),
        compiler_params=pltpu.CompilerParams(
            dimension_semantics=("parallel",),   # shards grid steps across TCs (v7x)
            vmem_limit_bytes=vmem_limit,
        ),
    )(x, w1, w2, wh1, wh2, bias)

    if return_padded:
        # Lane-dense [b_pad, 128] slab; lanes >= n_out are don't-care garbage.
        # Avoids an extra XLA slice pass when the consumer can handle it.
        return out_padded
    return out_padded[:B, :n_out]


def init_params(key, n_in, n_hidden, n_out):
    """Deterministic init (uniform +-1/sqrt(fan_in), like nn.Linear default)."""
    def linear(key, fan_in, fan_out):
        kw, kb = jax.random.split(key)
        bound = 1.0 / jnp.sqrt(fan_in)
        w = jax.random.uniform(kw, (fan_in, fan_out), jnp.float32, -bound, bound)
        b = jax.random.uniform(kb, (1, fan_out), jnp.float32, -bound, bound)
        return w, b

    ks = jax.random.split(key, 6)
    w1, b1 = linear(ks[0], n_in, n_hidden)
    w2, b2 = linear(ks[1], n_hidden, 2 * n_hidden)
    wa1, ba1 = linear(ks[2], 2 * n_hidden, n_hidden)
    wv1, bv1 = linear(ks[3], 2 * n_hidden, n_hidden)
    wa2, ba2 = linear(ks[4], n_hidden, n_out)
    wv2, bv2 = linear(ks[5], n_hidden, 1)
    return dict(w1=w1, b1=b1, w2=w2, b2=b2,
                wa1=wa1, ba1=ba1, wv1=wv1, bv1=bv1,
                wa2=wa2, ba2=ba2, wv2=wv2, bv2=bv2)


def dueling_dqn_reference(x, p):
    """Pure-JAX reference mirroring the PyTorch forward exactly (unfused)."""
    h = jax.nn.relu(x @ p["w1"] + p["b1"])
    h = jax.nn.relu(h @ p["w2"] + p["b2"])
    adv = jax.nn.relu(h @ p["wa1"] + p["ba1"])
    val = jax.nn.relu(h @ p["wv1"] + p["bv1"])
    adv = adv @ p["wa2"] + p["ba2"]
    val = val @ p["wv2"] + p["bv2"]                       # [B, 1], broadcasts
    return val + adv - jnp.mean(adv, axis=1, keepdims=True)


if __name__ == "__main__":
    n_in, n_hidden, n_out = 16, 32, 4

    key = jax.random.PRNGKey(0)
    kx, kp, kx2 = jax.random.split(key, 3)
    params = init_params(kp, n_in, n_hidden, n_out)
    packed = pack_params(params, n_hidden, n_out)   # f32 matmuls: tight check

    # Single grid-step case (B=8).
    x = jax.random.normal(kx, (8, n_in), jnp.float32)
    out = jax.block_until_ready(dueling_dqn_forward(x, packed))
    ref = dueling_dqn_reference(x, params)
    assert out.shape == (8, n_out)
    assert jnp.allclose(out, ref, atol=1e-5, rtol=1e-5)

    # Multi-step grid (exercises batch padding + >=2 grid steps / megacore path).
    x2 = jax.random.normal(kx2, (40, n_in), jnp.float32)
    out2 = jax.block_until_ready(dueling_dqn_forward(x2, packed))
    ref2 = dueling_dqn_reference(x2, params)
    assert out2.shape == (40, n_out)
    assert jnp.allclose(out2, ref2, atol=1e-5, rtol=1e-5)

    print("KERNEL_OK")
</pallas_src>

<mosaic_0001>
module attributes {stable_mosaic.version = 11 : i64} {
  func.func @_dueling_kernel(%arg0: i32, %arg1: memref<8x16xf32, #tpu.memory_space<vmem>>, %arg2: memref<16x32xf32, #tpu.memory_space<vmem>>, %arg3: memref<32x64xf32, #tpu.memory_space<vmem>>, %arg4: memref<64x64xf32, #tpu.memory_space<vmem>>, %arg5: memref<64x128xf32, #tpu.memory_space<vmem>>, %arg6: memref<4x128xf32, #tpu.memory_space<vmem>>, %arg7: memref<8x128xf32, #tpu.memory_space<vmem>>) attributes {dimension_semantics = [#tpu.dimension_semantics<parallel>], iteration_bounds = array<i64: 1>, scalar_prefetch = 0 : i64, scratch_operands = 0 : i64, tpu.core_type = #tpu.core_type<tc>, window_params = [{transform_indices = @transform_0, window_bounds = array<i64: 8, 16>}, {pipeline_mode = #tpu.pipeline_mode<synchronous>, transform_indices = @transform_1, window_bounds = array<i64: 16, 32>}, {pipeline_mode = #tpu.pipeline_mode<synchronous>, transform_indices = @transform_2, window_bounds = array<i64: 32, 64>}, {pipeline_mode = #tpu.pipeline_mode<synchronous>, transform_indices = @transform_3, window_bounds = array<i64: 64, 64>}, {pipeline_mode = #tpu.pipeline_mode<synchronous>, transform_indices = @transform_4, window_bounds = array<i64: 64, 128>}, {pipeline_mode = #tpu.pipeline_mode<synchronous>, transform_indices = @transform_5, window_bounds = array<i64: 4, 128>}, {transform_indices = @transform_6, window_bounds = array<i64: 8, 128>}]} {
    %c0 = arith.constant 0 : index
    %c0_0 = arith.constant 0 : index
    %0 = vector.load %arg1[%c0, %c0_0] : memref<8x16xf32, #tpu.memory_space<vmem>>, vector<8x16xf32>
    %c0_1 = arith.constant 0 : index
    %c0_2 = arith.constant 0 : index
    %1 = vector.load %arg2[%c0_1, %c0_2] : memref<16x32xf32, #tpu.memory_space<vmem>>, vector<16x32xf32>
    %cst = arith.constant dense<0.000000e+00> : vector<8x32xf32>
    %2 = tpu.matmul %0, %1, %cst {dimension_numbers = #tpu.dot_dimension_numbers<[1], [0], [0], [1], [0, 0, 1, 1], [], []>} : vector<8x16xf32>, vector<16x32xf32>, vector<8x32xf32> -> vector<8x32xf32>
    %c0_3 = arith.constant 0 : index
    %c0_4 = arith.constant 0 : index
    %3 = vector.load %arg6[%c0_3, %c0_4] : memref<4x128xf32, #tpu.memory_space<vmem>>, vector<1x32xf32>
    %4 = vector.broadcast %3 : vector<1x32xf32> to vector<8x32xf32>
    %5 = arith.addf %2, %4 : vector<8x32xf32>
    %cst_5 = arith.constant 0.000000e+00 : f32
    %6 = vector.broadcast %cst_5 : f32 to vector<8x32xf32>
    %7 = arith.maximumf %5, %6 : vector<8x32xf32>
    %c0_6 = arith.constant 0 : index
    %c0_7 = arith.constant 0 : index
    %8 = vector.load %arg3[%c0_6, %c0_7] : memref<32x64xf32, #tpu.memory_space<vmem>>, vector<32x64xf32>
    %cst_8 = arith.constant dense<0.000000e+00> : vector<8x64xf32>
    %9 = tpu.matmul %7, %8, %cst_8 {dimension_numbers = #tpu.dot_dimension_numbers<[1], [0], [0], [1], [0, 0, 1, 1], [], []>} : vector<8x32xf32>, vector<32x64xf32>, vector<8x64xf32> -> vector<8x64xf32>
    %c1 = arith.constant 1 : index
    %c0_9 = arith.constant 0 : index
    %10 = vector.load %arg6[%c1, %c0_9] : memref<4x128xf32, #tpu.memory_space<vmem>>, vector<1x64xf32>
    %11 = vector.broadcast %10 : vector<1x64xf32> to vector<8x64xf32>
    %12 = arith.addf %9, %11 : vector<8x64xf32>
    %cst_10 = arith.constant 0.000000e+00 : f32
    %13 = vector.broadcast %cst_10 : f32 to vector<8x64xf32>
    %14 = arith.maximumf %12, %13 : vector<8x64xf32>
    %c0_11 = arith.constant 0 : index
    %c0_12 = arith.constant 0 : index
    %15 = vector.load %arg4[%c0_11, %c0_12] : memref<64x64xf32, #tpu.memory_space<vmem>>, vector<64x64xf32>
    %cst_13 = arith.constant dense<0.000000e+00> : vector<8x64xf32>
    %16 = tpu.matmul %14, %15, %cst_13 {dimension_numbers = #tpu.dot_dimension_numbers<[1], [0], [0], [1], [0, 0, 1, 1], [], []>} : vector<8x64xf32>, vector<64x64xf32>, vector<8x64xf32> -> vector<8x64xf32>
    %c2 = arith.constant 2 : index
    %c0_14 = arith.constant 0 : index
    %17 = vector.load %arg6[%c2, %c0_14] : memref<4x128xf32, #tpu.memory_space<vmem>>, vector<1x64xf32>
    %18 = vector.broadcast %17 : vector<1x64xf32> to vector<8x64xf32>
    %19 = arith.addf %16, %18 : vector<8x64xf32>
    %cst_15 = arith.constant 0.000000e+00 : f32
    %20 = vector.broadcast %cst_15 : f32 to vector<8x64xf32>
    %21 = arith.maximumf %19, %20 : vector<8x64xf32>
    %c0_16 = arith.constant 0 : index
    %c0_17 = arith.constant 0 : index
    %22 = vector.load %arg5[%c0_16, %c0_17] : memref<64x128xf32, #tpu.memory_space<vmem>>, vector<64x128xf32>
    %cst_18 = arith.constant dense<0.000000e+00> : vector<8x128xf32>
    %23 = tpu.matmul %21, %22, %cst_18 {dimension_numbers = #tpu.dot_dimension_numbers<[1], [0], [0], [1], [0, 0, 1, 1], [], []>} : vector<8x64xf32>, vector<64x128xf32>, vector<8x128xf32> -> vector<8x128xf32>
    %c3 = arith.constant 3 : index
    %c0_19 = arith.constant 0 : index
    %24 = vector.load %arg6[%c3, %c0_19] : memref<4x128xf32, #tpu.memory_space<vmem>>, vector<1x128xf32>
    %25 = vector.broadcast %24 : vector<1x128xf32> to vector<8x128xf32>
    %26 = arith.addf %23, %25 : vector<8x128xf32>
    %27 = vector.extract_strided_slice %26 {offsets = [0, 0], sizes = [8, 4], strides = [1, 1]} : vector<8x128xf32> to vector<8x4xf32>
    %28 = vector.extract_strided_slice %26 {offsets = [0, 4], sizes = [8, 1], strides = [1, 1]} : vector<8x128xf32> to vector<8x1xf32>
    %cst_20 = arith.constant dense<0.000000e+00> : vector<8xf32>
    %29 = vector.multi_reduction <add>, %27, %cst_20 [1] : vector<8x4xf32> to vector<8xf32>
    %30 = vector.shape_cast %29 : vector<8xf32> to vector<8x1xf32>
    %cst_21 = arith.constant 2.500000e-01 : f32
    %31 = vector.broadcast %cst_21 : f32 to vector<8x1xf32>
    %32 = arith.mulf %30, %31 : vector<8x1xf32>
    %33 = arith.subf %28, %32 : vector<8x1xf32>
    %34 = vector.broadcast %33 : vector<8x1xf32> to vector<8x128xf32>
    %35 = arith.addf %26, %34 : vector<8x128xf32>
    %c0_22 = arith.constant 0 : index
    %c0_23 = arith.constant 0 : index
    %36 = vector.load %arg7[%c0_22, %c0_23] : memref<8x128xf32, #tpu.memory_space<vmem>>, vector<8x128xf32>
    tpu.vector_store %arg7[%c0_22, %c0_23], %35 {strides = array<i32>} : memref<8x128xf32, #tpu.memory_space<vmem>>, vector<8x128xf32>,
    return
  }
  func.func @transform_0(%arg0: i32) -> (i32, i32) {
    %c0_i32 = arith.constant 0 : i32
    %c0_i32_0 = arith.constant 0 : i32
    return %arg0, %c0_i32 : i32, i32
  }
  func.func @transform_1(%arg0: i32) -> (i32, i32) {
    %c0_i32 = arith.constant 0 : i32
    %c0_i32_0 = arith.constant 0 : i32
    %c0_i32_1 = arith.constant 0 : i32
    return %c0_i32, %c0_i32_0 : i32, i32
  }
  func.func @transform_2(%arg0: i32) -> (i32, i32) {
    %c0_i32 = arith.constant 0 : i32
    %c0_i32_0 = arith.constant 0 : i32
    %c0_i32_1 = arith.constant 0 : i32
    return %c0_i32, %c0_i32_0 : i32, i32
  }
  func.func @transform_3(%arg0: i32) -> (i32, i32) {
    %c0_i32 = arith.constant 0 : i32
    %c0_i32_0 = arith.constant 0 : i32
    %c0_i32_1 = arith.constant 0 : i32
    return %c0_i32, %c0_i32_0 : i32, i32
  }
  func.func @transform_4(%arg0: i32) -> (i32, i32) {
    %c0_i32 = arith.constant 0 : i32
    %c0_i32_0 = arith.constant 0 : i32
    %c0_i32_1 = arith.constant 0 : i32
    return %c0_i32, %c0_i32_0 : i32, i32
  }
  func.func @transform_5(%arg0: i32) -> (i32, i32) {
    %c0_i32 = arith.constant 0 : i32
    %c0_i32_0 = arith.constant 0 : i32
    %c0_i32_1 = arith.constant 0 : i32
    return %c0_i32, %c0_i32_0 : i32, i32
  }
  func.func @transform_6(%arg0: i32) -> (i32, i32) {
    %c0_i32 = arith.constant 0 : i32
    %c0_i32_0 = arith.constant 0 : i32
    return %arg0, %c0_i32 : i32, i32
  }
}

</mosaic_0001>

<bundles_post_ra>
// kernel: tpu_custom_call.1
= control target key start
LH: loop header
LB: loop body
LE: loop exit
PB: predicated region body
PF: predicated region fallthrough
CT: control target
= control target key end

     0   :  { %11 = vsyncpa [#allocation3], 0  ;;  %s895_s0 = inlined_call_operand.hbm [shape: f32[8,16], index: 0, kind: input, shape index: {}]   ;;  %s896_s1 = inlined_call_operand.hbm [shape: f32[16,32], index: 1, kind: input, shape index: {}]   ;;  %s897_s2 = inlined_call_operand.hbm [shape: f32[32,64], index: 2, kind: input, shape index: {}]   ;;  %s898_s3 = inlined_call_operand.hbm [shape: f32[64,64], index: 3, kind: input, shape index: {}]   ;;  %s899_s4 = inlined_call_operand.hbm [shape: f32[64,128], index: 4, kind: input, shape index: {}]   ;;  %s900_s5 = inlined_call_operand.vmem [shape: f32[4,128], index: 5, kind: input, shape index: {}]   ;;  %s901_s6 = inlined_call_operand.hbm [shape: f32[8,128], index: 6, kind: output, shape index: {}]  }
   0x1   :  { %12 = vsyncpa [#allocation6], 0 }
   0x2   :  { %13 = vsyncpa [#allocation9], 0 }
   0x3   :  { %14 = vsyncpa [#allocation4], 0  ;;  %s737_s21 = smov [#allocation5]   ;;  %s597_s25 = scalar_lea.hbm %s896_s1, 256 }
   0x4   :  { %s30_s22 = sshll.u32 %s737_s21, 4  ;;  %p598_p0 = scmp.ne.s32.totalorder %s896_s1, %s597_s25  ;;  %s31_s22 = int_to_ptr.vmem [resolvable:$true] %s30_s22 }
   0x5   :  { %p601_p1 = scmp.lt.u32.totalorder %s597_s25, %s896_s1 }
   0x7   :  { %p603_p2 = pnand %p601_p1, %p598_p0 }
   0x9   :  { %606 = shalt.err (!%p603_p2)
}
   0xa   :  { %s607_s30 = scalar_lea.vmem %s31_s22, 256  ;;  %p612_p4 = scmp.lt.s32.totalorder %s31_s22, %s31_s22 }
   0xb   :  { %p608_p3 = scmp.ne.s32.totalorder %s31_s22, %s607_s30  ;;  %p613_p5 = scmp.lt.s32.totalorder %s607_s30, %s607_s30 }
   0xd   :  { %p614_p6 = por %p613_p5, %p612_p4 }
   0xf   :  { %p615_p7 = pnand %p614_p6, %p608_p3 }
  0x11   :  { %618 = shalt.err (!%p615_p7)
}
  0x12   :  { %s738_s7 = smov 128   ;;  %s739_s8 = smov 8  }
  0x13   :  { %36 = dma.hbm_to_vmem [thread:$0]  %s896_s1, 256, %s31_s22, [#allocation6], %s738_s7, %s738_s7, %s739_s8  }
  0x14   :  { %s740_s11 = smov [#allocation8]   ;;  %s741_s13 = smov [#allocation2]  }
  0x15   :  { %s54_s12 = sshll.u32 %s740_s11, 4  ;;  %s21_s14 = sshll.u32 %s741_s13, 4  ;;  %s55_s12 = int_to_ptr.vmem [resolvable:$true] %s54_s12  ;;  %s22_s14 = int_to_ptr.vmem [resolvable:$true] %s21_s14 }
  0x16   :  { %s619_s17 = scalar_lea.hbm %s898_s3, 1024 }
  0x17   :  { %p620_p8 = scmp.ne.s32.totalorder %s898_s3, %s619_s17  ;;  %p623_p9 = scmp.lt.u32.totalorder %s619_s17, %s898_s3 }
  0x19   :  { %p625_p10 = pnand %p623_p9, %p620_p8 }
  0x1b   :  { %628 = shalt.err (!%p625_p10)
}
  0x1c   :  { %s629_s1 = scalar_lea.vmem %s55_s12, 1024  ;;  %p634_p12 = scmp.lt.s32.totalorder %s55_s12, %s55_s12 }
  0x1d   :  { %p630_p11 = scmp.ne.s32.totalorder %s55_s12, %s629_s1  ;;  %p635_p13 = scmp.lt.s32.totalorder %s629_s1, %s629_s1 }
  0x1f   :  { %p636_p0 = por %p635_p13, %p634_p12 }
  0x21   :  { %p637_p1 = pnand %p636_p0, %p630_p11 }
  0x23   :  { %640 = shalt.err (!%p637_p1)
}
  0x24   :  { %60 = dma.hbm_to_vmem [thread:$0]  %s898_s3, 1024, %s55_s12, [#allocation9], %s738_s7, %s738_s7, %s739_s8  }
  0x25   :  { %s641_s26 = scalar_lea.hbm %s895_s0, 128 }
  0x26   :  { %p642_p2 = scmp.ne.s32.totalorder %s895_s0, %s641_s26  ;;  %p645_p3 = scmp.lt.u32.totalorder %s641_s26, %s895_s0 }
  0x28   :  { %p647_p4 = pnand %p645_p3, %p642_p2 }
  0x2a   :  { %650 = shalt.err (!%p647_p4)
}
  0x2b   :  { %s651_s9 = scalar_lea.vmem %s22_s14, 128  ;;  %p656_p6 = scmp.lt.s32.totalorder %s22_s14, %s22_s14 }
  0x2c   :  { %p652_p5 = scmp.ne.s32.totalorder %s22_s14, %s651_s9  ;;  %p657_p7 = scmp.lt.s32.totalorder %s651_s9, %s651_s9 }
  0x2e   :  { %p658_p8 = por %p657_p7, %p656_p6 }
  0x30   :  { %p659_p9 = pnand %p658_p8, %p652_p5 }
  0x32   :  { %662 = shalt.err (!%p659_p9)
}
  0x33   :  { %24 = dma.hbm_to_vmem [thread:$0]  %s895_s0, 128, %s22_s14, [#allocation3]  }
  0x34   :  { %s742_s11 = smov [#allocation7]   ;;  %s743_s13 = smov [#allocation10]  }
  0x35   :  { %s42_s12 = sshll.u32 %s742_s11, 4  ;;  %s66_s15 = sshll.u32 %s743_s13, 4  ;;  %s43_s12 = int_to_ptr.vmem [resolvable:$true] %s42_s12  ;;  %s67_s15 = int_to_ptr.vmem [resolvable:$true] %s66_s15 }
  0x36   :  { %s663_s18 = scalar_lea.hbm %s897_s2, 512 }
  0x37   :  { %p664_p10 = scmp.ne.s32.totalorder %s897_s2, %s663_s18  ;;  %p667_p11 = scmp.lt.u32.totalorder %s663_s18, %s897_s2 }
  0x39   :  { %p669_p12 = pnand %p667_p11, %p664_p10 }
  0x3b   :  { %672 = shalt.err (!%p669_p12)
}
  0x3c   :  { %s673_s0 = scalar_lea.vmem %s43_s12, 512  ;;  %p678_p0 = scmp.lt.s32.totalorder %s43_s12, %s43_s12 }
  0x3d   :  { %p674_p13 = scmp.ne.s32.totalorder %s43_s12, %s673_s0  ;;  %p679_p1 = scmp.lt.s32.totalorder %s673_s0, %s673_s0 }
  0x3f   :  { %p680_p2 = por %p679_p1, %p678_p0 }
  0x41   :  { %p681_p3 = pnand %p680_p2, %p674_p13 }
  0x43   :  { %684 = shalt.err (!%p681_p3)
}
  0x44   :  { %48 = dma.hbm_to_vmem [thread:$0]  %s897_s2, 512, %s43_s12, [#allocation6], %s738_s7, %s738_s7, %s739_s8  }
  0x45   :  { %s685_s25 = scalar_lea.hbm %s899_s4, 1024 }
  0x46   :  { %p686_p4 = scmp.ne.s32.totalorder %s899_s4, %s685_s25  ;;  %p689_p5 = scmp.lt.u32.totalorder %s685_s25, %s899_s4 }
  0x48   :  { %p691_p6 = pnand %p689_p5, %p686_p4 }
  0x4a   :  { %694 = shalt.err (!%p691_p6)
}
  0x4b   :  { %s695_s30 = scalar_lea.vmem %s67_s15, 1024  ;;  %p700_p8 = scmp.lt.s32.totalorder %s67_s15, %s67_s15 }
  0x4c   :  { %p696_p7 = scmp.ne.s32.totalorder %s67_s15, %s695_s30  ;;  %p701_p9 = scmp.lt.s32.totalorder %s695_s30, %s695_s30 }
  0x4e   :  { %p702_p10 = por %p701_p9, %p700_p8 }
  0x50   :  { %p703_p11 = pnand %p702_p10, %p696_p7 }
  0x52   :  { %706 = shalt.err (!%p703_p11)
}
  0x53   :  { %72 = dma.hbm_to_vmem [thread:$0]  %s899_s4, 1024, %s67_s15, [#allocation9], %s738_s7, %s738_s7, %s739_s8  }
  0x54   :  { %729 = dma.done.wait [#allocation3], 128  }
  0x55   :  { %730 = vsyncadd [#allocation3], 4294967168 }
  0x56   :  { %731 = dma.done.wait [#allocation6], 768  }
  0x57   :  { %732 = vsyncadd [#allocation6], 4294966528 }
  0x58   :  { %733 = dma.done.wait [#allocation9], 2048  }
  0x59   :  { %734 = vsyncadd [#allocation9], 4294965248  ;;  %v744_v0 = vmov 0.0|0.0   ;;  %vm745_vm0 = vmmov 0   ;;  %v746_v1 = vmov 0.0   ;;  %v91_v2 = vld [vmem:[#allocation5] sm:$0xff] }
  0x5a   :  { %551 = vmatprep.subr.bf16.mxu0 %v744_v0  ;;  %499 = vmatprep.mubr.msk.f32.mxu0 %vm745_vm0, %v746_v1  ;;  %v92_v3 = vld [vmem:[#allocation5 + $0x8] sm:$0xff]  ;;  %v173_v5 = vld [vmem:[#allocation7] sm:$0xff]  ;;  %v174_v6 = vld [vmem:[#allocation7 + $0x8] sm:$0xff]  ;;  %vm98_vm1 = vcmask 130048   ;;  %vm182_vm2 = vcmask 261120   ;;  %vm270_vm3 = vcmask 523264  }
  0x5b   :  { %554 = vmatprep.subr.bf16.mxu1 %v744_v0  ;;  %510 = vmatprep.mubr.msk.f32.mxu1 %vm745_vm0, %v746_v1  ;;  %v552_v4 = vpack.c.bf16 %v92_v3, %v91_v2  ;;  %v555_v7 = vpack.c.bf16 %v174_v6, %v173_v5  ;;  %v90_v8 = vld [vmem:[#allocation2] sm:$0xff]  ;;  %v175_v9 = vld [vmem:[#allocation7 + $0x10] sm:$0xff]  ;;  %v176_v10 = vld [vmem:[#allocation7 + $0x18] sm:$0xff]  ;;  %vm431_vm4 = vcmask 31744   ;;  %v747_v56 = vmov 4   ;;  %s748_s15 = smov [#allocation11]  }
  0x5c   :  { %v558_v11 = vpack.c.bf16 %v176_v10, %v175_v9  ;;  %v257_v12 = vld [vmem:[#allocation8] sm:$0xff]  ;;  %v258_v13 = vld [vmem:[#allocation8 + $0x8] sm:$0xff]  ;;  %v259_v14 = vld [vmem:[#allocation8 + $0x10] sm:$0xff]  ;;  %596 = vset.pattern.permute.xlu0 %v747_v56  ;;  %s450_s16 = sshll.u32 %s748_s15, 4  ;;  %s451_s16 = int_to_ptr.vmem [resolvable:$true] %s450_s16 }
  0x5d   :  { %553 = vmatpush3.bf16.msra.mxu0 %v552_v4  ;;  %556 = vmatpush3.bf16.msra.mxu1 %v555_v7  ;;  %v561_v15 = vpack.c.bf16 %v258_v13, %v257_v12  ;;  %v260_v16 = vld [vmem:[#allocation8 + $0x18] sm:$0xff]  ;;  %v261_v18 = vld [vmem:[#allocation8 + $0x20] sm:$0xff]  ;;  %v262_v19 = vld [vmem:[#allocation8 + $0x28] sm:$0xff]  ;;  %s707_s17 = scalar_lea.vmem %s451_s16, 128  ;;  %p712_p13 = scmp.lt.s32.totalorder %s451_s16, %s451_s16 }
  0x5e   :  { %560 = vmatprep.subr.bf16.mxu0 %v744_v0  ;;  %557 = vmatprep.subr.bf16.mxu1 %v744_v0  ;;  %v564_v17 = vpack.c.bf16 %v260_v16, %v259_v14  ;;  %v567_v20 = vpack.c.bf16 %v262_v19, %v261_v18  ;;  %v461_v21 = vld [vmem:[%s900_s5] ss:$0 sm:$0xff]  ;;  %v263_v26 = vld [vmem:[#allocation8 + $0x30] sm:$0xff]  ;;  %v264_v27 = vld [vmem:[#allocation8 + $0x38] sm:$0xff]  ;;  %p708_p12 = scmp.ne.s32.totalorder %s451_s16, %s707_s17  ;;  %p713_p0 = scmp.lt.s32.totalorder %s707_s17, %s707_s17 }
  0x5f   :  { %v570_v28 = vpack.c.bf16 %v264_v27, %v263_v26  ;;  %v345_v29 = vld [vmem:[#allocation10] sm:$0xff]  ;;  %v346_v30 = vld [vmem:[#allocation10 + $0x8] sm:$0xff]  ;;  %v347_v31 = vld [vmem:[#allocation10 + $0x10] sm:$0xff] }
  0x60   :  { %500 = vmatmul.mubr.msk.f32.vlgmr.msra.gmra.mrb[0].mxu0 %vm98_vm1, %v90_v8  ;;  %v573_v32 = vpack.c.bf16 %v346_v30, %v345_v29  ;;  %v348_v33 = vld [vmem:[#allocation10 + $0x18] sm:$0xff]  ;;  %v349_v35 = vld [vmem:[#allocation10 + $0x20] sm:$0xff]  ;;  %v350_v36 = vld [vmem:[#allocation10 + $0x28] sm:$0xff]  ;;  %p714_p1 = por %p713_p0, %p712_p13 }
  0x61   :  { %529 = vmatprep.mubr.msk.f32.mxu0 %vm745_vm0, %v746_v1  ;;  %559 = vmatpush3.bf16.msra.mxu1 %v558_v11  ;;  %v576_v34 = vpack.c.bf16 %v348_v33, %v347_v31  ;;  %v579_v37 = vpack.c.bf16 %v350_v36, %v349_v35  ;;  %v463_v38 = vld [vmem:[%s900_s5 + $0x1] ss:$0 sm:$0xff]  ;;  %v351_v43 = vld [vmem:[#allocation10 + $0x30] sm:$0xff]  ;;  %v352_v44 = vld [vmem:[#allocation10 + $0x38] sm:$0xff] }
  0x62   :  { %572 = vmatprep.subr.bf16.mxu1 %v744_v0  ;;  %562 = vmatpush3.bf16.msra.mxu0 %v561_v15  ;;  %v582_v45 = vpack.c.bf16 %v352_v44, %v351_v43  ;;  %v465_v46 = vld [vmem:[%s900_s5 + $0x2] ss:$0 sm:$0xff]  ;;  %v467_v51 = vld [vmem:[%s900_s5 + $0x3] ss:$0 sm:$0xff]  ;;  %p715_p2 = pnand %p714_p1, %p708_p12 }
  0x63   :  { %563 = vmatprep.subr.bf16.mxu0 %v744_v0 }
  0x66   :  { %565 = vmatpush3.bf16.msra.mxu0 %v564_v17 }
  0x67   :  { %566 = vmatprep.subr.bf16.mxu0 %v744_v0 }
  0x6a   :  { %568 = vmatpush3.bf16.msra.mxu0 %v567_v20 }
  0x6b   :  { %569 = vmatprep.subr.bf16.mxu0 %v744_v0 }
  0x6e   :  { %571 = vmatpush3.bf16.msra.mxu0 %v570_v28 }
 0x133   :  { %v168_v22 = vpop.f32.mrb[0].mxu0 }
 0x134   :  { %v169_v23 = vadd.f32 %v461_v21, %v168_v22  ;;  %v501_v24 = vpop.f32.mrb[1].mxu0 }
 0x136   :  { %v172_v25 = vmax.f32 %v169_v23, 0.0 }
 0x138   :  { %511 = vmatmul.mubr.msk.f32.vlgmr.msra.gmra.mrb[0].mxu1 %vm182_vm2, %v172_v25 }
 0x139   :  { %548 = vmatprep.mubr.msk.f32.mxu1 %vm745_vm0, %v746_v1  ;;  %574 = vmatpush3.bf16.msra.mxu1 %v573_v32 }
 0x13a   :  { %575 = vmatprep.subr.bf16.mxu1 %v744_v0 }
 0x13d   :  { %577 = vmatpush3.bf16.msra.mxu1 %v576_v34 }
 0x13e   :  { %578 = vmatprep.subr.bf16.mxu1 %v744_v0 }
 0x141   :  { %580 = vmatpush3.bf16.msra.mxu1 %v579_v37 }
 0x142   :  { %581 = vmatprep.subr.bf16.mxu1 %v744_v0 }
 0x145   :  { %583 = vmatpush3.bf16.msra.mxu1 %v582_v45 }
 0x20b   :  { %v252_v39 = vpop.f32.mrb[0].mxu1 }
 0x20c   :  { %v253_v40 = vadd.f32 %v463_v38, %v252_v39  ;;  %v512_v41 = vpop.f32.mrb[1].mxu1 }
 0x20e   :  { %v256_v42 = vmax.f32 %v253_v40, 0.0 }
 0x210   :  { %530 = vmatmul.mubr.msk.f32.vlgmr.msra.gmra.mrb[2].mxu0 %vm270_vm3, %v256_v42 }
 0x2e3   :  { %v340_v47 = vpop.f32.mrb[2].mxu0 }
 0x2e4   :  { %v341_v48 = vadd.f32 %v465_v46, %v340_v47  ;;  %v531_v49 = vpop.f32.mrb[3].mxu0 }
 0x2e6   :  { %v344_v50 = vmax.f32 %v341_v48, 0.0 }
 0x2e8   :  { %549 = vmatmul.mubr.msk.f32.vlgmr.msra.gmra.mrb[2].mxu1 %vm270_vm3, %v344_v50 }
 0x3bb   :  { %v427_v52 = vpop.f32.mrb[2].mxu1 }
 0x3bc   :  { %v428_v53 = vadd.f32 %v467_v51, %v427_v52  ;;  %v550_v54 = vpop.f32.mrb[3].mxu1 }
 0x3be   :  { %v432_v55 = vsel %vm431_vm4, %v428_v53, 0.0 }
 0x3bf   :  { %433 = vadd.xlane.f32.xlu0 %v432_v55 }
 0x44c   :  { %v434_v57 = vpop.xlane.xlu0 %433 }
 0x44d   :  { %v435_v58 = vmul.f32 0.25, %v434_v57 }
 0x44f   :  { %v436_v59 = vsub.f32 %v428_v53, %v435_v58 }
 0x451   :  { %439 = vperm.xlu0 %596, %v436_v59  }
 0x4d0   :  { %v440_v60 = vpop.permute.xlu0 %439 }
 0x4d1   :  { %v442_v61 = vadd.f32 %v440_v60, %v428_v53 }
 0x4d3   :  { %443 = vst [vmem:[#allocation11] sm:$0xff] %v442_v61 }
 0x4d4   :  { %718 = shalt.err (!%p715_p2)
}
 0x4d5   :  { %s719_s19 = scalar_lea.hbm %s901_s6, 128 }
 0x4d6   :  { %p720_p3 = scmp.ne.s32.totalorder %s901_s6, %s719_s19  ;;  %p723_p4 = scmp.lt.u32.totalorder %s719_s19, %s901_s6 }
 0x4d8   :  { %p725_p5 = pnand %p723_p4, %p720_p3 }
 0x4da   :  { %728 = shalt.err (!%p725_p5)
}
 0x4db   :  { %453 = dma.vmem_to_hbm [thread:$0]  %s451_s16, 128, %s901_s6, [#allocation4]  }
 0x4dc   :  { %735 = dma.done.wait [#allocation4], 128  }
 0x4dd   :  { %736 = vsyncadd [#allocation4], 4294967168 }
 0x4de   :  { %457 = vsyncpa [#allocation3], 1 }
 0x4df   :  { %458 = vsyncpa [#allocation6], 1 }
 0x4e0   :  { %459 = vsyncpa [#allocation9], 1 }
 0x4e1   :  { %460 = vsyncpa [#allocation4], 1 }

</bundles_post_ra>
